<compile_context>
chip_gen: v7x
topology: tpu7x:2x2x1
jax: 0.10.0
libtpu: 0.0.40
codegen_flags: <defaults>
</compile_context>

<pallas_src>
import math

import jax
import jax.numpy as jnp
from jax.experimental import pallas as pl
from jax.experimental.pallas import tpu as pltpu  # noqa: F401  (TPU backend)


# ---------------------------------------------------------------------------
# Kernel: fused scale + double-PReLU for all four tensors in one invocation.
# ---------------------------------------------------------------------------
def _scale_prelu2(v, a0, a1):
    v = v * 2.0 - 1.0
    v = jnp.where(v >= 0.0, v, a0 * v)   # F.prelu(v, external slope)
    v = jnp.where(v >= 0.0, v, a1 * v)   # F.prelu(v, own parameter)
    return v


def _fused_kernel(x_ref, sx_ref, y_ref, sy_ref, z_ref, sz_ref, w_ref, sw_ref,
                  ox_ref, oy_ref, oz_ref, ow_ref):
    # x: (N, C) slab, channels on the LANE axis; sx: (2, C) -> row0 ext, row1 own
    ox_ref[...] = _scale_prelu2(x_ref[...], sx_ref[0:1, :], sx_ref[1:2, :])
    # y/z/w: (rows, M) slabs, one channel per row (sublane axis);
    # slope tables: (rows, 2) -> col0 ext, col1 own
    oy_ref[...] = _scale_prelu2(y_ref[...], sy_ref[:, 0:1], sy_ref[:, 1:2])
    oz_ref[...] = _scale_prelu2(z_ref[...], sz_ref[:, 0:1], sz_ref[:, 1:2])
    ow_ref[...] = _scale_prelu2(w_ref[...], sw_ref[:, 0:1], sw_ref[:, 1:2])


# ---------------------------------------------------------------------------
# Host-side (static) layout helpers.
# ---------------------------------------------------------------------------
def _chan_vec(s, C):
    """PyTorch F.prelu slope: size C or size 1 (broadcast)."""
    s = jnp.asarray(s, jnp.float32).reshape(-1)
    if s.shape[0] == 1:
        s = jnp.broadcast_to(s, (C,))
    assert s.shape[0] == C
    return s


def _pack_lane_slopes(s_ext, s_own, C):
    # (2, C): channels along the lane axis, row 0 = external, row 1 = own.
    return jnp.stack([_chan_vec(s_ext, C), _chan_vec(s_own, C)], axis=0)


def _pack_row_slopes(s_ext, s_own, N, C):
    # (N*C, 2): per-row slope table, col 0 = external, col 1 = own.
    packed = jnp.stack([_chan_vec(s_ext, C), _chan_vec(s_own, C)], axis=1)  # (C, 2)
    if N > 1:
        packed = jnp.tile(packed, (N, 1))
    return packed


def _row_slab(t):
    # (N, C, rest...) -> (N*C, prod(rest)); channel index = row % C. Pure reshape.
    N, C = t.shape[0], t.shape[1]
    M = math.prod(t.shape[2:]) if t.ndim > 2 else 1
    return t.reshape(N * C, M)


# ---------------------------------------------------------------------------
# Jitted forward: one pallas_call for all four tensors.
# ---------------------------------------------------------------------------
@jax.jit
def _forward(x, y, z, w, w0, w1, w2, w3, w4, w5, w6, w7):
    # x is 2-D (N, C): keep channels lane-dense.
    C0 = x.shape[1]
    sx = _pack_lane_slopes(w0, w4, C0)

    y2 = _row_slab(y)
    z2 = _row_slab(z)
    wv = _row_slab(w)
    sy = _pack_row_slopes(w1, w5, y.shape[0], y.shape[1])
    sz = _pack_row_slopes(w2, w6, z.shape[0], z.shape[1])
    sw = _pack_row_slopes(w3, w7, w.shape[0], w.shape[1])

    ox, oy, oz, ow = pl.pallas_call(
        _fused_kernel,
        out_shape=(
            jax.ShapeDtypeStruct(x.shape, x.dtype),
            jax.ShapeDtypeStruct(y2.shape, y.dtype),
            jax.ShapeDtypeStruct(z2.shape, z.dtype),
            jax.ShapeDtypeStruct(wv.shape, w.dtype),
        ),
    )(x, sx, y2, sy, z2, sz, wv, sw)

    return ox, oy.reshape(y.shape), oz.reshape(z.shape), ow.reshape(w.shape)


class Model:
    """JAX/Pallas port of the PyTorch Model."""

    def __init__(self, key):
        k4, k5, k6, k7 = jax.random.split(key, 4)
        # nn.Parameter(torch.rand(n)) -> uniform [0, 1)
        self.w4 = jax.random.uniform(k4, (16,), dtype=jnp.float32)
        self.w5 = jax.random.uniform(k5, (2,), dtype=jnp.float32)
        self.w6 = jax.random.uniform(k6, (3,), dtype=jnp.float32)
        self.w7 = jax.random.uniform(k7, (1,), dtype=jnp.float32)

    def __call__(self, x, y, z, w, w0, w1, w2, w3):
        return _forward(x, y, z, w, w0, w1, w2, w3,
                        self.w4, self.w5, self.w6, self.w7)


# ---------------------------------------------------------------------------
# Pure-JAX reference (PyTorch F.prelu semantics).
# ---------------------------------------------------------------------------
def _prelu_ref(x, slope):
    C = x.shape[1]
    s = slope.reshape(-1)
    if s.shape[0] == 1:
        s = jnp.broadcast_to(s, (C,))
    s = s.reshape((1, C) + (1,) * (x.ndim - 2))
    return jnp.where(x >= 0.0, x, s * x)


def _ref_forward(model, x, y, z, w, w0, w1, w2, w3):
    x = x * 2 - 1
    y = y * 2 - 1
    z = z * 2 - 1
    w = w * 2 - 1
    x = _prelu_ref(_prelu_ref(x, w0), model.w4)
    y = _prelu_ref(_prelu_ref(y, w1), model.w5)
    z = _prelu_ref(_prelu_ref(z, w2), model.w6)
    w = _prelu_ref(_prelu_ref(w, w3), model.w7)
    return (x, y, z, w)


if __name__ == "__main__":
    key = jax.random.PRNGKey(0)
    kp, kx, ky, kz, kw, k0, k1, k2, k3 = jax.random.split(key, 9)

    model = Model(kp)

    # shapes from the pnnx test (already small)
    x = jax.random.uniform(kx, (1, 16), dtype=jnp.float32)
    y = jax.random.uniform(ky, (1, 2, 16), dtype=jnp.float32)
    z = jax.random.uniform(kz, (1, 3, 12, 16), dtype=jnp.float32)
    w = jax.random.uniform(kw, (1, 5, 7, 9, 11), dtype=jnp.float32)
    w0 = jax.random.uniform(k0, (16,), dtype=jnp.float32)
    w1 = jax.random.uniform(k1, (2,), dtype=jnp.float32)
    w2 = jax.random.uniform(k2, (3,), dtype=jnp.float32)
    w3 = jax.random.uniform(k3, (1,), dtype=jnp.float32)

    outs = model(x, y, z, w, w0, w1, w2, w3)
    outs = jax.block_until_ready(outs)

    refs = _ref_forward(model, x, y, z, w, w0, w1, w2, w3)
    for o, r in zip(outs, refs):
        assert o.shape == r.shape and o.dtype == r.dtype
        assert jnp.max(jnp.abs(o - r)) < 1e-5

    print("KERNEL_OK")
</pallas_src>

<mosaic_0001>
module attributes {stable_mosaic.version = 11 : i64} {
  func.func @_fused_kernel(%arg0: memref<1x16xf32, #tpu.memory_space<vmem>>, %arg1: memref<2x16xf32, #tpu.memory_space<vmem>>, %arg2: memref<2x16xf32, #tpu.memory_space<vmem>>, %arg3: memref<2x2xf32, #tpu.memory_space<vmem>>, %arg4: memref<3x192xf32, #tpu.memory_space<vmem>>, %arg5: memref<3x2xf32, #tpu.memory_space<vmem>>, %arg6: memref<5x693xf32, #tpu.memory_space<vmem>>, %arg7: memref<5x2xf32, #tpu.memory_space<vmem>>, %arg8: memref<1x16xf32, #tpu.memory_space<vmem>>, %arg9: memref<2x16xf32, #tpu.memory_space<vmem>>, %arg10: memref<3x192xf32, #tpu.memory_space<vmem>>, %arg11: memref<5x693xf32, #tpu.memory_space<vmem>>) attributes {dimension_semantics = [], scalar_prefetch = 0 : i64, scratch_operands = 0 : i64, tpu.core_type = #tpu.core_type<tc>} {
    %c0 = arith.constant 0 : index
    %c0_0 = arith.constant 0 : index
    %0 = vector.load %arg0[%c0, %c0_0] : memref<1x16xf32, #tpu.memory_space<vmem>>, vector<1x16xf32>
    %c0_1 = arith.constant 0 : index
    %c0_2 = arith.constant 0 : index
    %1 = vector.load %arg1[%c0_1, %c0_2] : memref<2x16xf32, #tpu.memory_space<vmem>>, vector<1x16xf32>
    %c1 = arith.constant 1 : index
    %c0_3 = arith.constant 0 : index
    %2 = vector.load %arg1[%c1, %c0_3] : memref<2x16xf32, #tpu.memory_space<vmem>>, vector<1x16xf32>
    %cst = arith.constant 2.000000e+00 : f32
    %3 = vector.broadcast %cst : f32 to vector<1x16xf32>
    %4 = arith.mulf %0, %3 : vector<1x16xf32>
    %cst_4 = arith.constant 1.000000e+00 : f32
    %5 = vector.broadcast %cst_4 : f32 to vector<1x16xf32>
    %6 = arith.subf %4, %5 : vector<1x16xf32>
    %cst_5 = arith.constant 0.000000e+00 : f32
    %7 = vector.broadcast %cst_5 : f32 to vector<1x16xf32>
    %8 = arith.cmpf oge, %6, %7 : vector<1x16xf32>
    %9 = arith.mulf %1, %6 : vector<1x16xf32>
    %10 = arith.select %8, %6, %9 : vector<1x16xi1>, vector<1x16xf32>
    %cst_6 = arith.constant 0.000000e+00 : f32
    %11 = vector.broadcast %cst_6 : f32 to vector<1x16xf32>
    %12 = arith.cmpf oge, %10, %11 : vector<1x16xf32>
    %13 = arith.mulf %2, %10 : vector<1x16xf32>
    %14 = arith.select %12, %10, %13 : vector<1x16xi1>, vector<1x16xf32>
    %c0_7 = arith.constant 0 : index
    %c0_8 = arith.constant 0 : index
    %15 = vector.load %arg8[%c0_7, %c0_8] : memref<1x16xf32, #tpu.memory_space<vmem>>, vector<1x16xf32>
    tpu.vector_store %arg8[%c0_7, %c0_8], %14 {strides = array<i32>} : memref<1x16xf32, #tpu.memory_space<vmem>>, vector<1x16xf32>,
    %c0_9 = arith.constant 0 : index
    %c0_10 = arith.constant 0 : index
    %16 = vector.load %arg2[%c0_9, %c0_10] : memref<2x16xf32, #tpu.memory_space<vmem>>, vector<2x16xf32>
    %c0_11 = arith.constant 0 : index
    %c0_12 = arith.constant 0 : index
    %17 = vector.load %arg3[%c0_11, %c0_12] : memref<2x2xf32, #tpu.memory_space<vmem>>, vector<2x1xf32>
    %c0_13 = arith.constant 0 : index
    %c1_14 = arith.constant 1 : index
    %18 = vector.load %arg3[%c0_13, %c1_14] : memref<2x2xf32, #tpu.memory_space<vmem>>, vector<2x1xf32>
    %cst_15 = arith.constant 2.000000e+00 : f32
    %19 = vector.broadcast %cst_15 : f32 to vector<2x16xf32>
    %20 = arith.mulf %16, %19 : vector<2x16xf32>
    %cst_16 = arith.constant 1.000000e+00 : f32
    %21 = vector.broadcast %cst_16 : f32 to vector<2x16xf32>
    %22 = arith.subf %20, %21 : vector<2x16xf32>
    %cst_17 = arith.constant 0.000000e+00 : f32
    %23 = vector.broadcast %cst_17 : f32 to vector<2x16xf32>
    %24 = arith.cmpf oge, %22, %23 : vector<2x16xf32>
    %25 = vector.broadcast %17 : vector<2x1xf32> to vector<2x16xf32>
    %26 = arith.mulf %25, %22 : vector<2x16xf32>
    %27 = arith.select %24, %22, %26 : vector<2x16xi1>, vector<2x16xf32>
    %cst_18 = arith.constant 0.000000e+00 : f32
    %28 = vector.broadcast %cst_18 : f32 to vector<2x16xf32>
    %29 = arith.cmpf oge, %27, %28 : vector<2x16xf32>
    %30 = vector.broadcast %18 : vector<2x1xf32> to vector<2x16xf32>
    %31 = arith.mulf %30, %27 : vector<2x16xf32>
    %32 = arith.select %29, %27, %31 : vector<2x16xi1>, vector<2x16xf32>
    %c0_19 = arith.constant 0 : index
    %c0_20 = arith.constant 0 : index
    %33 = vector.load %arg9[%c0_19, %c0_20] : memref<2x16xf32, #tpu.memory_space<vmem>>, vector<2x16xf32>
    tpu.vector_store %arg9[%c0_19, %c0_20], %32 {strides = array<i32>} : memref<2x16xf32, #tpu.memory_space<vmem>>, vector<2x16xf32>,
    %c0_21 = arith.constant 0 : index
    %c0_22 = arith.constant 0 : index
    %34 = vector.load %arg4[%c0_21, %c0_22] : memref<3x192xf32, #tpu.memory_space<vmem>>, vector<3x192xf32>
    %c0_23 = arith.constant 0 : index
    %c0_24 = arith.constant 0 : index
    %35 = vector.load %arg5[%c0_23, %c0_24] : memref<3x2xf32, #tpu.memory_space<vmem>>, vector<3x1xf32>
    %c0_25 = arith.constant 0 : index
    %c1_26 = arith.constant 1 : index
    %36 = vector.load %arg5[%c0_25, %c1_26] : memref<3x2xf32, #tpu.memory_space<vmem>>, vector<3x1xf32>
    %cst_27 = arith.constant 2.000000e+00 : f32
    %37 = vector.broadcast %cst_27 : f32 to vector<3x192xf32>
    %38 = arith.mulf %34, %37 : vector<3x192xf32>
    %cst_28 = arith.constant 1.000000e+00 : f32
    %39 = vector.broadcast %cst_28 : f32 to vector<3x192xf32>
    %40 = arith.subf %38, %39 : vector<3x192xf32>
    %cst_29 = arith.constant 0.000000e+00 : f32
    %41 = vector.broadcast %cst_29 : f32 to vector<3x192xf32>
    %42 = arith.cmpf oge, %40, %41 : vector<3x192xf32>
    %43 = vector.broadcast %35 : vector<3x1xf32> to vector<3x192xf32>
    %44 = arith.mulf %43, %40 : vector<3x192xf32>
    %45 = arith.select %42, %40, %44 : vector<3x192xi1>, vector<3x192xf32>
    %cst_30 = arith.constant 0.000000e+00 : f32
    %46 = vector.broadcast %cst_30 : f32 to vector<3x192xf32>
    %47 = arith.cmpf oge, %45, %46 : vector<3x192xf32>
    %48 = vector.broadcast %36 : vector<3x1xf32> to vector<3x192xf32>
    %49 = arith.mulf %48, %45 : vector<3x192xf32>
    %50 = arith.select %47, %45, %49 : vector<3x192xi1>, vector<3x192xf32>
    %c0_31 = arith.constant 0 : index
    %c0_32 = arith.constant 0 : index
    %51 = vector.load %arg10[%c0_31, %c0_32] : memref<3x192xf32, #tpu.memory_space<vmem>>, vector<3x192xf32>
    tpu.vector_store %arg10[%c0_31, %c0_32], %50 {strides = array<i32>} : memref<3x192xf32, #tpu.memory_space<vmem>>, vector<3x192xf32>,
    %c0_33 = arith.constant 0 : index
    %c0_34 = arith.constant 0 : index
    %52 = vector.load %arg6[%c0_33, %c0_34] : memref<5x693xf32, #tpu.memory_space<vmem>>, vector<5x693xf32>
    %c0_35 = arith.constant 0 : index
    %c0_36 = arith.constant 0 : index
    %53 = vector.load %arg7[%c0_35, %c0_36] : memref<5x2xf32, #tpu.memory_space<vmem>>, vector<5x1xf32>
    %c0_37 = arith.constant 0 : index
    %c1_38 = arith.constant 1 : index
    %54 = vector.load %arg7[%c0_37, %c1_38] : memref<5x2xf32, #tpu.memory_space<vmem>>, vector<5x1xf32>
    %cst_39 = arith.constant 2.000000e+00 : f32
    %55 = vector.broadcast %cst_39 : f32 to vector<5x693xf32>
    %56 = arith.mulf %52, %55 : vector<5x693xf32>
    %cst_40 = arith.constant 1.000000e+00 : f32
    %57 = vector.broadcast %cst_40 : f32 to vector<5x693xf32>
    %58 = arith.subf %56, %57 : vector<5x693xf32>
    %cst_41 = arith.constant 0.000000e+00 : f32
    %59 = vector.broadcast %cst_41 : f32 to vector<5x693xf32>
    %60 = arith.cmpf oge, %58, %59 : vector<5x693xf32>
    %61 = vector.broadcast %53 : vector<5x1xf32> to vector<5x693xf32>
    %62 = arith.mulf %61, %58 : vector<5x693xf32>
    %63 = arith.select %60, %58, %62 : vector<5x693xi1>, vector<5x693xf32>
    %cst_42 = arith.constant 0.000000e+00 : f32
    %64 = vector.broadcast %cst_42 : f32 to vector<5x693xf32>
    %65 = arith.cmpf oge, %63, %64 : vector<5x693xf32>
    %66 = vector.broadcast %54 : vector<5x1xf32> to vector<5x693xf32>
    %67 = arith.mulf %66, %63 : vector<5x693xf32>
    %68 = arith.select %65, %63, %67 : vector<5x693xi1>, vector<5x693xf32>
    %c0_43 = arith.constant 0 : index
    %c0_44 = arith.constant 0 : index
    %69 = vector.load %arg11[%c0_43, %c0_44] : memref<5x693xf32, #tpu.memory_space<vmem>>, vector<5x693xf32>
    tpu.vector_store %arg11[%c0_43, %c0_44], %68 {strides = array<i32>} : memref<5x693xf32, #tpu.memory_space<vmem>>, vector<5x693xf32>,
    return
  }
}

</mosaic_0001>

<bundles_post_ra>
// kernel: _forward.1
= control target key start
LH: loop header
LB: loop body
LE: loop exit
PB: predicated region body
PF: predicated region fallthrough
CT: control target
= control target key end

     0   :  { %17 = vsyncpa [#allocation3], 0  ;;  %v280_v2 = vmov 0   ;;  %v281_v4 = vmov 1   ;;  %s447_s0 = inlined_call_operand.vmem [shape: f32[1,16], index: 0, kind: input, shape index: {}]   ;;  %s448_s1 = inlined_call_operand.vmem [shape: f32[2,16], index: 1, kind: input, shape index: {}]   ;;  %s449_s2 = inlined_call_operand.vmem [shape: f32[2,16], index: 2, kind: input, shape index: {}]   ;;  %s450_s3 = inlined_call_operand.vmem [shape: f32[2,2], index: 3, kind: input, shape index: {}]   ;;  %s451_s4 = inlined_call_operand.vmem [shape: f32[3,192], index: 4, kind: input, shape index: {}]   ;;  %s452_s5 = inlined_call_operand.vmem [shape: f32[3,2], index: 5, kind: input, shape index: {}]   ;;  %s453_s6 = inlined_call_operand.vmem [shape: f32[5,693], index: 6, kind: input, shape index: {}]   ;;  %s454_s7 = inlined_call_operand.vmem [shape: f32[5,2], index: 7, kind: input, shape index: {}]   ;;  %s455_s8 = inlined_call_operand.hbm [shape: f32[1,16], index: 8, kind: output, shape index: {0}]   ;;  %s456_s9 = inlined_call_operand.hbm [shape: f32[2,16], index: 9, kind: output, shape index: {1}]   ;;  %s457_s10 = inlined_call_operand.vmem [shape: f32[3,192], index: 10, kind: output, shape index: {2}]   ;;  %s458_s11 = inlined_call_operand.vmem [shape: f32[5,693], index: 11, kind: output, shape index: {3}]  }
   0x1   :  { %v114_v0 = vld [vmem:[%s454_s7] sm:$0x1f]  ;;  %229 = vset.pattern.permute.xlu1 %v280_v2  ;;  %228 = vset.pattern.permute.xlu0 %v280_v2 }
   0x2   :  { %v70_v1 = vld [vmem:[%s452_s5] sm:$0x7]  ;;  %135 = vperm.xlu1 %229, %v114_v0  }
   0x3   :  { %76 = vperm.xlu0 %228, %v70_v1   ;;  %v49_v3 = vld [vmem:[%s450_s3] sm:$0x3] }
   0x6   :  { %230 = vset.pattern.permute.xlu1 %v281_v4 }
   0x7   :  { %55 = vperm.xlu0 %228, %v49_v3  }
   0x8   :  { %18 = vsyncpa [#allocation5], 0  ;;  %91 = vperm.xlu1 %230, %v70_v1   ;;  %v35_v5 = vld [vmem:[%s447_s0] sm:$0x1]  ;;  %v37_v9 = vld [vmem:[%s448_s1 + $0x1] sm:$0x1] }
   0x9   :  { %v38_v6 = vmul.f32 2.0, %v35_v5  ;;  %v36_v7 = vld [vmem:[%s448_s1] sm:$0x1]  ;;  %s282_s26 = smov [#allocation2]   ;;  %vm46_vm2 = vcmask 122880  }
   0xa   :  { %s185_s27 = sshll.u32 %s282_s26, 4  ;;  %s186_s27 = int_to_ptr.vmem [resolvable:$true] %s185_s27 }
   0xb   :  { %231 = vset.pattern.permute.xlu0 %v281_v4  ;;  %v215_v8 = vadd.f32 -1.0, %v38_v6  ;;  %s232_s0 = scalar_lea.vmem %s186_s27, 16  ;;  %s236_s28 = scalar_lea.vmem %s186_s27, 32 }
   0xc   :  { %157 = vperm.xlu1 %230, %v114_v0   ;;  %62 = vperm.xlu0 %231, %v49_v3   ;;  %p233_p0 = scmp.ne.s32.totalorder %s186_s27, %s232_s0  ;;  %p237_p1 = scmp.lt.s32.totalorder %s186_s27, %s186_s27 }
   0xd   :  { %vm40_vm0 = vcmp.ge.f32.partialorder %v215_v8, 0.0  ;;  %v41_v10 = vmul.f32 %v215_v8, %v36_v7  ;;  %p238_p2 = scmp.lt.s32.totalorder %s236_s28, %s232_s0 }
   0xf   :  { %v42_v11 = vsel %vm40_vm0, %v215_v8, %v41_v10  ;;  %p239_p3 = por %p238_p2, %p237_p1 }
  0x10   :  { %vm43_vm1 = vcmp.ge.f32.partialorder %v42_v11, 0.0  ;;  %v44_v12 = vmul.f32 %v42_v11, %v37_v9 }
  0x11   :  { %p240_p4 = pnand %p239_p3, %p233_p0 }
  0x12   :  { %v45_v13 = vsel %vm43_vm1, %v42_v11, %v44_v12 }
  0x13   :  { %47 = vst.msk [vmem:[#allocation2] sm:$0x1] %vm46_vm2, %v45_v13 }
  0x14   :  { %243 = shalt.err (!%p240_p4)
}
  0x15   :  { %s244_s30 = scalar_lea.hbm %s455_s8, 16 }
  0x16   :  { %p245_p5 = scmp.ne.s32.totalorder %s455_s8, %s244_s30  ;;  %p248_p6 = scmp.lt.u32.totalorder %s244_s30, %s455_s8 }
  0x18   :  { %p250_p7 = pnand %p248_p6, %p245_p5 }
  0x1a   :  { %253 = shalt.err (!%p250_p7)
}
  0x1b   :  { %188 = dma.vmem_to_hbm [thread:$0]  %s186_s27, 16, %s455_s8, [#allocation3]   ;;  %v69_v14 = vld [vmem:[%s451_s4] sm:$0x77]  ;;  %v109_v17 = vld [vmem:[%s453_s6 + $0x8] sm:$0x1f] }
  0x1c   :  { %v108_v15 = vld [vmem:[%s453_s6] sm:$0x1f]  ;;  %v71_v16 = vmul.f32 2.0, %v69_v14  ;;  %v110_v18 = vld [vmem:[%s453_s6 + $0x10] sm:$0x1f]  ;;  %v116_v23 = vmul.f32 2.0, %v109_v17 }
  0x1d   :  { %v111_v19 = vld [vmem:[%s453_s6 + $0x18] sm:$0x1f]  ;;  %v112_v20 = vld [vmem:[%s453_s6 + $0x20] sm:$0x1f]  ;;  %v113_v21 = vld [vmem:[%s453_s6 + $0x28] sm:$0x1f] }
  0x1e   :  { %v115_v22 = vmul.f32 2.0, %v108_v15  ;;  %v117_v24 = vmul.f32 2.0, %v110_v18  ;;  %v48_v25 = vld [vmem:[%s449_s2] sm:$0x3]  ;;  %v217_v26 = vadd.f32 -1.0, %v71_v16  ;;  %v118_v27 = vmul.f32 2.0, %v111_v19 }
  0x1f   :  { %v119_v28 = vmul.f32 2.0, %v112_v20  ;;  %v120_v29 = vmul.f32 2.0, %v113_v21  ;;  %v50_v30 = vmul.f32 2.0, %v48_v25  ;;  %v219_v32 = vadd.f32 -1.0, %v116_v23  ;;  %s283_s2 = smov [#allocation4]  }
  0x20   :  { %v218_v31 = vadd.f32 -1.0, %v115_v22  ;;  %v220_v33 = vadd.f32 -1.0, %v117_v24  ;;  %v80_v34 = vcombine.high %v217_v26, %v217_v26  ;;  %v221_v35 = vadd.f32 -1.0, %v118_v27  ;;  %s195_s6 = sshll.u32 %s283_s2, 4  ;;  %s196_s6 = int_to_ptr.vmem [resolvable:$true] %s195_s6 }
  0x21   :  { %v222_v36 = vadd.f32 -1.0, %v119_v28  ;;  %v223_v37 = vadd.f32 -1.0, %v120_v29  ;;  %v216_v38 = vadd.f32 -1.0, %v50_v30  ;;  %vm73_vm3 = vcmp.ge.f32.partialorder %v217_v26, 0.0  ;;  %s254_s21 = scalar_lea.vmem %s196_s6, 32  ;;  %p259_p9 = scmp.lt.s32.totalorder %s196_s6, %s196_s6 }
  0x22   :  { %vm104_vm4 = vcmask 1042432   ;;  %vm127_vm5 = vcmp.ge.f32.partialorder %v218_v31, 0.0  ;;  %vm128_vm6 = vcmp.ge.f32.partialorder %v219_v32, 0.0  ;;  %vm129_vm7 = vcmp.ge.f32.partialorder %v220_v33, 0.0  ;;  %p255_p8 = scmp.ne.s32.totalorder %s196_s6, %s254_s21  ;;  %p260_p10 = scmp.lt.s32.totalorder %s254_s21, %s254_s21 }
  0x23   :  { %vm130_vm8 = vcmp.ge.f32.partialorder %v221_v35, 0.0  ;;  %vm131_vm9 = vcmp.ge.f32.partialorder %v222_v36, 0.0  ;;  %vm132_vm10 = vcmp.ge.f32.partialorder %v223_v37, 0.0  ;;  %vm52_vm12 = vcmp.ge.f32.partialorder %v216_v38, 0.0 }
  0x24   :  { %vm177_vm13 = vcmask 430080   ;;  %vm67_vm0 = vcmask 123904   ;;  %p261_p11 = por %p260_p10, %p259_p9 }
  0x26   :  { %p262_p12 = pnand %p261_p11, %p255_p8 }
  0x81   :  { %v136_v40 = vpop.permute.xlu1 %135 }
  0x82   :  { %v77_v39 = vpop.permute.xlu0 %76  ;;  %v138_v43 = vmul.f32 %v218_v31, %v136_v40  ;;  %v139_v44 = vmul.f32 %v219_v32, %v136_v40  ;;  %v140_v45 = vmul.f32 %v220_v33, %v136_v40  ;;  %v141_v46 = vmul.f32 %v221_v35, %v136_v40 }
  0x83   :  { %v82_v41 = vmul.f32 %v217_v26, %v77_v39  ;;  %v83_v42 = vmul.f32 %v80_v34, %v77_v39  ;;  %v142_v47 = vmul.f32 %v222_v36, %v136_v40  ;;  %v143_v48 = vmul.f32 %v223_v37, %v136_v40 }
  0x84   :  { %v144_v51 = vsel %vm127_vm5, %v218_v31, %v138_v43  ;;  %v145_v52 = vsel %vm128_vm6, %v219_v32, %v139_v44  ;;  %v146_v56 = vsel %vm129_vm7, %v220_v33, %v140_v45  ;;  %v147_v58 = vsel %vm130_vm8, %v221_v35, %v141_v46 }
  0x85   :  { %v86_v49 = vcombine.low %v82_v41, %v83_v42  ;;  %v148_v59 = vsel %vm131_vm9, %v222_v36, %v142_v47  ;;  %v149_v60 = vsel %vm132_vm10, %v223_v37, %v143_v48  ;;  %vm150_vm14 = vcmp.ge.f32.partialorder %v144_v51, 0.0 }
  0x86   :  { %v56_v50 = vpop.permute.xlu0 %55  ;;  %vm151_vm15 = vcmp.ge.f32.partialorder %v145_v52, 0.0  ;;  %vm152_vm2 = vcmp.ge.f32.partialorder %v146_v56, 0.0  ;;  %vm153_vm5 = vcmp.ge.f32.partialorder %v147_v58, 0.0  ;;  %vm154_vm6 = vcmp.ge.f32.partialorder %v148_v59, 0.0 }
  0x87   :  { %v58_v53 = vmul.f32 %v216_v38, %v56_v50  ;;  %v92_v54 = vpop.permute.xlu1 %91  ;;  %v88_v55 = vsel %vm73_vm3, %v217_v26, %v86_v49  ;;  %vm155_vm11 = vcmp.ge.f32.partialorder %v149_v60, 0.0  ;;  %vm459_vm7 = vcmask 522244  }
  0x88   :  { %v95_v57 = vcombine.high %v88_v55, %v88_v55  ;;  %vm89_vm1 = vcmp.ge.f32.partialorder %v88_v55, 0.0  ;;  %v97_v62 = vmul.f32 %v92_v54, %v88_v55  ;;  %vm106_vm8 = vmor %vm459_vm7, %vm104_vm4 }
  0x89   :  { %v59_v61 = vsel %vm52_vm12, %v216_v38, %v58_v53 }
  0x8a   :  { %v98_v63 = vmul.f32 %v95_v57, %v92_v54  ;;  %vm60_vm3 = vcmp.ge.f32.partialorder %v59_v61, 0.0 }
  0x8b   :  { %v158_v0 = vpop.permute.xlu1 %157  ;;  %v63_v1 = vpop.permute.xlu0 %62 }
  0x8c   :  { %v101_v2 = vcombine.low %v97_v62, %v98_v63  ;;  %v160_v3 = vmul.f32 %v158_v0, %v144_v51  ;;  %v161_v4 = vmul.f32 %v158_v0, %v145_v52  ;;  %v162_v5 = vmul.f32 %v158_v0, %v146_v56 }
  0x8d   :  { %v163_v6 = vmul.f32 %v158_v0, %v147_v58  ;;  %v164_v7 = vmul.f32 %v158_v0, %v148_v59  ;;  %v165_v8 = vmul.f32 %v158_v0, %v149_v60  ;;  %v65_v9 = vmul.f32 %v63_v1, %v59_v61 }
  0x8e   :  { %v103_v10 = vsel %vm89_vm1, %v88_v55, %v101_v2  ;;  %v166_v11 = vsel %vm150_vm14, %v144_v51, %v160_v3  ;;  %v167_v12 = vsel %vm151_vm15, %v145_v52, %v161_v4  ;;  %v168_v13 = vsel %vm152_vm2, %v146_v56, %v162_v5 }
  0x8f   :  { %107 = vst.msk [vmem:[%s457_s10] sm:$0x77] %vm106_vm8, %v103_v10  ;;  %v169_v14 = vsel %vm153_vm5, %v147_v58, %v163_v6  ;;  %v170_v15 = vsel %vm154_vm6, %v148_v59, %v164_v7  ;;  %v171_v16 = vsel %vm155_vm11, %v149_v60, %v165_v8  ;;  %172 = vst [vmem:[%s458_s11] sm:$0x1f] %v166_v11 }
  0x90   :  { %173 = vst [vmem:[%s458_s11 + $0x8] sm:$0x1f] %v167_v12  ;;  %174 = vst [vmem:[%s458_s11 + $0x10] sm:$0x1f] %v168_v13  ;;  %v66_v17 = vsel %vm60_vm3, %v59_v61, %v65_v9 }
  0x91   :  { %175 = vst [vmem:[%s458_s11 + $0x18] sm:$0x1f] %v169_v14  ;;  %176 = vst [vmem:[%s458_s11 + $0x20] sm:$0x1f] %v170_v15 }
  0x92   :  { %178 = vst.msk [vmem:[%s458_s11 + $0x28] sm:$0x1f] %vm177_vm13, %v171_v16 }
  0x93   :  { %68 = vst.msk [vmem:[#allocation4] sm:$0x3] %vm67_vm0, %v66_v17 }
  0x94   :  { %265 = shalt.err (!%p262_p12)
}
  0x95   :  { %s266_s7 = scalar_lea.hbm %s456_s9, 32 }
  0x96   :  { %p267_p13 = scmp.ne.s32.totalorder %s456_s9, %s266_s7  ;;  %p270_p0 = scmp.lt.u32.totalorder %s266_s7, %s456_s9 }
  0x98   :  { %p272_p1 = pnand %p270_p0, %p267_p13 }
  0x9a   :  { %275 = shalt.err (!%p272_p1)
}
  0x9b   :  { %198 = dma.vmem_to_hbm [thread:$0]  %s196_s6, 32, %s456_s9, [#allocation5]  }
  0x9c   :  { %276 = dma.done.wait [#allocation3], 16  }
  0x9d   :  { %277 = vsyncadd [#allocation3], 4294967280 }
  0x9e   :  { %278 = dma.done.wait [#allocation5], 32  }
  0x9f   :  { %279 = vsyncadd [#allocation5], 4294967264 }
  0xa0   :  { %213 = vsyncpa [#allocation3], 1 }
  0xa1   :  { %214 = vsyncpa [#allocation5], 1 }

</bundles_post_ra>
